<compile_context>
chip_gen: v7x
topology: tpu7x:2x2x1
jax: 0.10.0
libtpu: 0.0.40
codegen_flags: <defaults>
</compile_context>

<pallas_src>
import functools

import jax
import jax.numpy as jnp
from jax.experimental import pallas as pl
from jax.experimental.pallas import tpu as pltpu


def _round_up(n: int, m: int) -> int:
    return ((n + m - 1) // m) * m


# ----------------------------------------------------------------------------
# Fused kernel: all Linear layers chained inside one body.
#   refs layout: (x_ref, w0, b0, w1, b1, ..., out0, out1, ..., out_{L-1})
#   out_i holds the PRE-activation output of Linear i (matches self.activations);
#   out_{L-1} is the network output (no ReLU on the last layer).
# ----------------------------------------------------------------------------
def _mlp_fused_kernel(*refs, num_layers: int):
    x_ref = refs[0]
    param_refs = refs[1:1 + 2 * num_layers]
    out_refs = refs[1 + 2 * num_layers:]

    h = x_ref[...]                                   # (TB, D0_pad) f32
    for i in range(num_layers):
        w = param_refs[2 * i][...]                   # (Din_pad, Dout_pad)
        b = param_refs[2 * i + 1][...]               # (1, Dout_pad) f32
        # One f32->bf16 pack per layer when weights are bf16 (v5e-friendly);
        # f32 accumulate on the MXU either way.
        lhs = h if h.dtype == w.dtype else h.astype(w.dtype)
        y = jnp.dot(lhs, w, preferred_element_type=jnp.float32)
        y = y + b                                    # f32 epilogue
        out_refs[i][...] = y.astype(out_refs[i].dtype)
        if i < num_layers - 1:
            h = jnp.maximum(y, 0.0)                  # ReLU between hidden layers


# ----------------------------------------------------------------------------
# Parameter handling
# ----------------------------------------------------------------------------
def init_mlp_params(key, input_size, hidden_sizes, output_size):
    """PyTorch-layout params: [(W (Out, In), b (Out,)), ...].

    Kaiming-normal-ish init (mode='fan_out', relu), zero bias — like
    MLP._init_weights.
    """
    layer_sizes = [input_size] + list(hidden_sizes) + [output_size]
    params = []
    for i in range(len(layer_sizes) - 1):
        fan_in, fan_out = layer_sizes[i], layer_sizes[i + 1]
        key, wkey = jax.random.split(key)
        std = (2.0 / fan_out) ** 0.5
        w = std * jax.random.normal(wkey, (fan_out, fan_in), dtype=jnp.float32)
        b = jnp.zeros((fan_out,), dtype=jnp.float32)
        params.append((w, b))
    return params


def prepare_mlp_params(params, *, use_bf16_matmul: bool = True):
    """One-time preprocessing (do NOT call per forward pass).

    Transposes each weight to (In, Out), zero-pads every feature dim to a
    multiple of 128 (lane width), reshapes biases to (1, Out_pad), and (by
    default) stores weights in bf16 for the fast MXU path (f32 accumulate and
    f32 epilogue are kept inside the kernel).
    """
    layer_dims = [params[0][0].shape[1]] + [w.shape[0] for (w, _) in params]
    padded_dims = [_round_up(d, 128) for d in layer_dims]

    weights, biases = [], []
    for i, (w, b) in enumerate(params):
        out_d, in_d = w.shape
        in_pad, out_pad = padded_dims[i], padded_dims[i + 1]
        wt = jnp.zeros((in_pad, out_pad), jnp.float32).at[:in_d, :out_d].set(w.T)
        if use_bf16_matmul:
            wt = wt.astype(jnp.bfloat16)
        bp = jnp.zeros((1, out_pad), jnp.float32).at[0, :out_d].set(b)
        weights.append(wt)
        biases.append(bp)

    return {
        "weights": weights,          # list of (Din_pad, Dout_pad)
        "biases": biases,            # list of (1, Dout_pad) f32
        "layer_dims": layer_dims,    # logical [D0, D1, ..., Dout]
        "padded_dims": padded_dims,  # padded  [D0_pad, ..., Dout_pad]
    }


# ----------------------------------------------------------------------------
# Forward pass: one pallas_call for the whole network.
# ----------------------------------------------------------------------------
def mlp_forward(prepared, x, *, hidden_act_dtype=jnp.float32):
    """Returns (final_output (B, Dout), activations list — pre-ReLU per Linear).

    hidden_act_dtype: dtype used to stream hidden-layer pre-activations to HBM
    (set jnp.bfloat16 to halve writeback traffic if the consumer tolerates it).
    The final output is always float32.
    """
    B, in_dim = x.shape
    layer_dims = prepared["layer_dims"]
    padded_dims = prepared["padded_dims"]
    assert in_dim == layer_dims[0], "input feature size mismatch"
    num_layers = len(prepared["weights"])

    # Batch tiling: multiple of 8 (f32 sublane).  For large batches use
    # 256-row tiles (amortizes the ~0.35 us per-grid-step overhead, longer MXU
    # M streams) while guaranteeing >= 2 grid steps so the "parallel" axis can
    # shard across v7x's 2 TensorCores.
    b_pad = _round_up(B, 8)
    if b_pad <= 128:
        tb = b_pad
    else:
        tb = min(256, _round_up((b_pad + 1) // 2, 8))
    b_pad = _round_up(b_pad, tb)
    grid = (b_pad // tb,)

    in_pad = padded_dims[0]
    x_pad = jnp.zeros((b_pad, in_pad), jnp.float32).at[:B, :in_dim].set(
        x.astype(jnp.float32))

    flat_params = []
    for w, b in zip(prepared["weights"], prepared["biases"]):
        flat_params.extend([w, b])

    out_dtypes = [hidden_act_dtype] * (num_layers - 1) + [jnp.float32]
    out_shapes = tuple(
        jax.ShapeDtypeStruct((b_pad, padded_dims[l + 1]), out_dtypes[l])
        for l in range(num_layers))
    out_specs = [
        pl.BlockSpec((tb, padded_dims[l + 1]), lambda i: (i, 0))
        for l in range(num_layers)
    ]

    # FLOP / byte estimate so XLA schedules the fused custom call correctly.
    flops = 2 * b_pad * sum(
        padded_dims[l] * padded_dims[l + 1] for l in range(num_layers))
    param_bytes = sum(int(p.size) * p.dtype.itemsize for p in flat_params)
    out_bytes = sum(
        b_pad * padded_dims[l + 1] * jnp.dtype(out_dtypes[l]).itemsize
        for l in range(num_layers))
    x_bytes = int(x_pad.size) * 4
    cost = pl.CostEstimate(flops=flops, transcendentals=0,
                           bytes_accessed=param_bytes + out_bytes + x_bytes)

    def _vmem_limit(param_buf_count: int) -> int:
        # params (resident) + double-buffered x tile + double-buffered out tiles
        tile_bytes = 2 * tb * in_pad * 4 + 2 * sum(
            tb * padded_dims[l + 1] * jnp.dtype(out_dtypes[l]).itemsize
            for l in range(num_layers))
        est = param_buf_count * param_bytes + tile_bytes
        # generous headroom for compiler temporaries; cap at 64 MiB so the
        # request is also valid on v7x (64 MiB physical VMEM per TC).
        return int(min(max(2 * est + (8 << 20), 16 << 20), 64 << 20))

    kernel = functools.partial(_mlp_fused_kernel, num_layers=num_layers)

    def _call(single_buffer_params: bool):
        use_single = single_buffer_params and hasattr(pl, "Buffered")
        in_specs = [pl.BlockSpec((tb, in_pad), lambda i: (i, 0))]
        for w, b in zip(prepared["weights"], prepared["biases"]):
            if use_single:
                # Grid-invariant blocks: single buffer (no 2x VMEM for weights).
                in_specs.append(pl.BlockSpec(w.shape, lambda i: (0, 0),
                                             pipeline_mode=pl.Buffered(1)))
                in_specs.append(pl.BlockSpec(b.shape, lambda i: (0, 0),
                                             pipeline_mode=pl.Buffered(1)))
            else:
                in_specs.append(pl.BlockSpec(w.shape, lambda i: (0, 0)))
                in_specs.append(pl.BlockSpec(b.shape, lambda i: (0, 0)))
        param_buf_count = 1 if use_single else 2
        return pl.pallas_call(
            kernel,
            grid=grid,
            in_specs=in_specs,
            out_specs=out_specs,
            out_shape=out_shapes,
            compiler_params=pltpu.CompilerParams(
                dimension_semantics=("parallel",),
                vmem_limit_bytes=_vmem_limit(param_buf_count)),
            cost_estimate=cost,
        )(x_pad, *flat_params)

    try:
        outs = _call(True)
    except Exception:
        # pl.Buffered(1) unsupported by this JAX build -> default double buffering.
        outs = _call(False)

    # Slice padded outputs back to logical shapes (cheap plain-JAX slices).
    activations = [
        outs[l][:B, :layer_dims[l + 1]] for l in range(num_layers)
    ]
    return activations[-1], activations


# ----------------------------------------------------------------------------
# Pure-JAX reference (PyTorch-layout weights)
# ----------------------------------------------------------------------------
def mlp_reference(params, x):
    n = len(params)
    acts = []
    for i, (w, b) in enumerate(params):
        x = x @ w.T + b
        acts.append(x)                 # pre-ReLU, like self.activations
        if i < n - 1:
            x = jnp.maximum(x, 0.0)
    return x, acts


if __name__ == "__main__":
    key = jax.random.PRNGKey(0)
    batch = 4
    input_size = 16
    hidden_sizes = [32, 32]
    output_size = 8

    key, pkey, xkey = jax.random.split(key, 3)
    params = init_mlp_params(pkey, input_size, hidden_sizes, output_size)
    x = jax.random.normal(xkey, (batch, input_size), dtype=jnp.float32)

    ref_out, ref_acts = mlp_reference(params, x)

    # 1) Exact f32 path (bit-tight vs. the pure-JAX reference).
    prepared_f32 = prepare_mlp_params(params, use_bf16_matmul=False)
    out_f32, acts_f32 = mlp_forward(prepared_f32, x)
    out_f32 = jax.block_until_ready(out_f32)
    assert out_f32.shape == (batch, output_size)
    assert jnp.allclose(out_f32, ref_out, atol=1e-4, rtol=1e-4), "f32 output mismatch"
    for a, ra in zip(acts_f32, ref_acts):
        assert a.shape == ra.shape
        assert jnp.allclose(a, ra, atol=1e-4, rtol=1e-4), "f32 activation mismatch"

    # 2) Default performance path: bf16 MXU operands, f32 accumulate/epilogue.
    #    bf16 operand rounding -> looser tolerance vs. the f32 reference.
    prepared = prepare_mlp_params(params)   # use_bf16_matmul=True by default
    out, acts = mlp_forward(prepared, x)
    out = jax.block_until_ready(out)
    assert out.shape == (batch, output_size)
    assert jnp.allclose(out, ref_out, atol=5e-2, rtol=5e-2), "bf16 output mismatch"
    for a, ra in zip(acts, ref_acts):
        assert a.shape == ra.shape
        assert jnp.allclose(a, ra, atol=5e-2, rtol=5e-2), "bf16 activation mismatch"

    print("KERNEL_OK")
</pallas_src>

<mosaic_0001>
module attributes {stable_mosaic.version = 11 : i64} {
  func.func @_mlp_fused_kernel(%arg0: i32, %arg1: memref<8x128xf32, #tpu.memory_space<vmem>>, %arg2: memref<128x128xf32, #tpu.memory_space<vmem>>, %arg3: memref<1x128xf32, #tpu.memory_space<vmem>>, %arg4: memref<128x128xf32, #tpu.memory_space<vmem>>, %arg5: memref<1x128xf32, #tpu.memory_space<vmem>>, %arg6: memref<128x128xf32, #tpu.memory_space<vmem>>, %arg7: memref<1x128xf32, #tpu.memory_space<vmem>>, %arg8: memref<8x128xf32, #tpu.memory_space<vmem>>, %arg9: memref<8x128xf32, #tpu.memory_space<vmem>>, %arg10: memref<8x128xf32, #tpu.memory_space<vmem>>) attributes {dimension_semantics = [#tpu.dimension_semantics<parallel>], iteration_bounds = array<i64: 1>, scalar_prefetch = 0 : i64, scratch_operands = 0 : i64, tpu.core_type = #tpu.core_type<tc>, window_params = [{transform_indices = @transform_0, window_bounds = array<i64: 8, 128>}, {pipeline_mode = #tpu.pipeline_mode<synchronous>, transform_indices = @transform_1, window_bounds = array<i64: 128, 128>}, {pipeline_mode = #tpu.pipeline_mode<synchronous>, transform_indices = @transform_2, window_bounds = array<i64: 1, 128>}, {pipeline_mode = #tpu.pipeline_mode<synchronous>, transform_indices = @transform_3, window_bounds = array<i64: 128, 128>}, {pipeline_mode = #tpu.pipeline_mode<synchronous>, transform_indices = @transform_4, window_bounds = array<i64: 1, 128>}, {pipeline_mode = #tpu.pipeline_mode<synchronous>, transform_indices = @transform_5, window_bounds = array<i64: 128, 128>}, {pipeline_mode = #tpu.pipeline_mode<synchronous>, transform_indices = @transform_6, window_bounds = array<i64: 1, 128>}, {transform_indices = @transform_7, window_bounds = array<i64: 8, 128>}, {transform_indices = @transform_8, window_bounds = array<i64: 8, 128>}, {transform_indices = @transform_9, window_bounds = array<i64: 8, 128>}]} {
    %c0 = arith.constant 0 : index
    %c0_0 = arith.constant 0 : index
    %0 = vector.load %arg1[%c0, %c0_0] : memref<8x128xf32, #tpu.memory_space<vmem>>, vector<8x128xf32>
    %c0_1 = arith.constant 0 : index
    %c0_2 = arith.constant 0 : index
    %1 = vector.load %arg2[%c0_1, %c0_2] : memref<128x128xf32, #tpu.memory_space<vmem>>, vector<128x128xf32>
    %c0_3 = arith.constant 0 : index
    %c0_4 = arith.constant 0 : index
    %2 = vector.load %arg3[%c0_3, %c0_4] : memref<1x128xf32, #tpu.memory_space<vmem>>, vector<1x128xf32>
    %cst = arith.constant dense<0.000000e+00> : vector<8x128xf32>
    %3 = tpu.matmul %0, %1, %cst {dimension_numbers = #tpu.dot_dimension_numbers<[1], [0], [0], [1], [0, 0, 1, 1], [], []>} : vector<8x128xf32>, vector<128x128xf32>, vector<8x128xf32> -> vector<8x128xf32>
    %4 = vector.broadcast %2 : vector<1x128xf32> to vector<8x128xf32>
    %5 = arith.addf %3, %4 : vector<8x128xf32>
    %c0_5 = arith.constant 0 : index
    %c0_6 = arith.constant 0 : index
    %6 = vector.load %arg8[%c0_5, %c0_6] : memref<8x128xf32, #tpu.memory_space<vmem>>, vector<8x128xf32>
    tpu.vector_store %arg8[%c0_5, %c0_6], %5 {strides = array<i32>} : memref<8x128xf32, #tpu.memory_space<vmem>>, vector<8x128xf32>,
    %cst_7 = arith.constant 0.000000e+00 : f32
    %7 = vector.broadcast %cst_7 : f32 to vector<8x128xf32>
    %8 = arith.maximumf %5, %7 : vector<8x128xf32>
    %c0_8 = arith.constant 0 : index
    %c0_9 = arith.constant 0 : index
    %9 = vector.load %arg4[%c0_8, %c0_9] : memref<128x128xf32, #tpu.memory_space<vmem>>, vector<128x128xf32>
    %c0_10 = arith.constant 0 : index
    %c0_11 = arith.constant 0 : index
    %10 = vector.load %arg5[%c0_10, %c0_11] : memref<1x128xf32, #tpu.memory_space<vmem>>, vector<1x128xf32>
    %cst_12 = arith.constant dense<0.000000e+00> : vector<8x128xf32>
    %11 = tpu.matmul %8, %9, %cst_12 {dimension_numbers = #tpu.dot_dimension_numbers<[1], [0], [0], [1], [0, 0, 1, 1], [], []>} : vector<8x128xf32>, vector<128x128xf32>, vector<8x128xf32> -> vector<8x128xf32>
    %12 = vector.broadcast %10 : vector<1x128xf32> to vector<8x128xf32>
    %13 = arith.addf %11, %12 : vector<8x128xf32>
    %c0_13 = arith.constant 0 : index
    %c0_14 = arith.constant 0 : index
    %14 = vector.load %arg9[%c0_13, %c0_14] : memref<8x128xf32, #tpu.memory_space<vmem>>, vector<8x128xf32>
    tpu.vector_store %arg9[%c0_13, %c0_14], %13 {strides = array<i32>} : memref<8x128xf32, #tpu.memory_space<vmem>>, vector<8x128xf32>,
    %cst_15 = arith.constant 0.000000e+00 : f32
    %15 = vector.broadcast %cst_15 : f32 to vector<8x128xf32>
    %16 = arith.maximumf %13, %15 : vector<8x128xf32>
    %c0_16 = arith.constant 0 : index
    %c0_17 = arith.constant 0 : index
    %17 = vector.load %arg6[%c0_16, %c0_17] : memref<128x128xf32, #tpu.memory_space<vmem>>, vector<128x128xf32>
    %c0_18 = arith.constant 0 : index
    %c0_19 = arith.constant 0 : index
    %18 = vector.load %arg7[%c0_18, %c0_19] : memref<1x128xf32, #tpu.memory_space<vmem>>, vector<1x128xf32>
    %cst_20 = arith.constant dense<0.000000e+00> : vector<8x128xf32>
    %19 = tpu.matmul %16, %17, %cst_20 {dimension_numbers = #tpu.dot_dimension_numbers<[1], [0], [0], [1], [0, 0, 1, 1], [], []>} : vector<8x128xf32>, vector<128x128xf32>, vector<8x128xf32> -> vector<8x128xf32>
    %20 = vector.broadcast %18 : vector<1x128xf32> to vector<8x128xf32>
    %21 = arith.addf %19, %20 : vector<8x128xf32>
    %c0_21 = arith.constant 0 : index
    %c0_22 = arith.constant 0 : index
    %22 = vector.load %arg10[%c0_21, %c0_22] : memref<8x128xf32, #tpu.memory_space<vmem>>, vector<8x128xf32>
    tpu.vector_store %arg10[%c0_21, %c0_22], %21 {strides = array<i32>} : memref<8x128xf32, #tpu.memory_space<vmem>>, vector<8x128xf32>,
    return
  }
  func.func @transform_0(%arg0: i32) -> (i32, i32) {
    %c0_i32 = arith.constant 0 : i32
    %c0_i32_0 = arith.constant 0 : i32
    return %arg0, %c0_i32 : i32, i32
  }
  func.func @transform_1(%arg0: i32) -> (i32, i32) {
    %c0_i32 = arith.constant 0 : i32
    %c0_i32_0 = arith.constant 0 : i32
    %c0_i32_1 = arith.constant 0 : i32
    return %c0_i32, %c0_i32_0 : i32, i32
  }
  func.func @transform_2(%arg0: i32) -> (i32, i32) {
    %c0_i32 = arith.constant 0 : i32
    %c0_i32_0 = arith.constant 0 : i32
    %c0_i32_1 = arith.constant 0 : i32
    return %c0_i32, %c0_i32_0 : i32, i32
  }
  func.func @transform_3(%arg0: i32) -> (i32, i32) {
    %c0_i32 = arith.constant 0 : i32
    %c0_i32_0 = arith.constant 0 : i32
    %c0_i32_1 = arith.constant 0 : i32
    return %c0_i32, %c0_i32_0 : i32, i32
  }
  func.func @transform_4(%arg0: i32) -> (i32, i32) {
    %c0_i32 = arith.constant 0 : i32
    %c0_i32_0 = arith.constant 0 : i32
    %c0_i32_1 = arith.constant 0 : i32
    return %c0_i32, %c0_i32_0 : i32, i32
  }
  func.func @transform_5(%arg0: i32) -> (i32, i32) {
    %c0_i32 = arith.constant 0 : i32
    %c0_i32_0 = arith.constant 0 : i32
    %c0_i32_1 = arith.constant 0 : i32
    return %c0_i32, %c0_i32_0 : i32, i32
  }
  func.func @transform_6(%arg0: i32) -> (i32, i32) {
    %c0_i32 = arith.constant 0 : i32
    %c0_i32_0 = arith.constant 0 : i32
    %c0_i32_1 = arith.constant 0 : i32
    return %c0_i32, %c0_i32_0 : i32, i32
  }
  func.func @transform_7(%arg0: i32) -> (i32, i32) {
    %c0_i32 = arith.constant 0 : i32
    %c0_i32_0 = arith.constant 0 : i32
    return %arg0, %c0_i32 : i32, i32
  }
  func.func @transform_8(%arg0: i32) -> (i32, i32) {
    %c0_i32 = arith.constant 0 : i32
    %c0_i32_0 = arith.constant 0 : i32
    return %arg0, %c0_i32 : i32, i32
  }
  func.func @transform_9(%arg0: i32) -> (i32, i32) {
    %c0_i32 = arith.constant 0 : i32
    %c0_i32_0 = arith.constant 0 : i32
    return %arg0, %c0_i32 : i32, i32
  }
}

module attributes {stable_mosaic.version = 11 : i64} {
  func.func @_mlp_fused_kernel(%arg0: i32, %arg1: memref<8x128xf32, #tpu.memory_space<vmem>>, %arg2: memref<128x128xf32, #tpu.memory_space<vmem>>, %arg3: memref<1x128xf32, #tpu.memory_space<vmem>>, %arg4: memref<128x128xf32, #tpu.memory_space<vmem>>, %arg5: memref<1x128xf32, #tpu.memory_space<vmem>>, %arg6: memref<128x128xf32, #tpu.memory_space<vmem>>, %arg7: memref<1x128xf32, #tpu.memory_space<vmem>>, %arg8: memref<8x128xf32, #tpu.memory_space<vmem>>, %arg9: memref<8x128xf32, #tpu.memory_space<vmem>>, %arg10: memref<8x128xf32, #tpu.memory_space<vmem>>) attributes {dimension_semantics = [#tpu.dimension_semantics<parallel>], iteration_bounds = array<i64: 1>, scalar_prefetch = 0 : i64, scratch_operands = 0 : i64, tpu.core_type = #tpu.core_type<tc>, window_params = [{transform_indices = @transform_0, window_bounds = array<i64: 8, 128>}, {pipeline_mode = #tpu.pipeline_mode<synchronous>, transform_indices = @transform_1, window_bounds = array<i64: 128, 128>}, {pipeline_mode = #tpu.pipeline_mode<synchronous>, transform_indices = @transform_2, window_bounds = array<i64: 1, 128>}, {pipeline_mode = #tpu.pipeline_mode<synchronous>, transform_indices = @transform_3, window_bounds = array<i64: 128, 128>}, {pipeline_mode = #tpu.pipeline_mode<synchronous>, transform_indices = @transform_4, window_bounds = array<i64: 1, 128>}, {pipeline_mode = #tpu.pipeline_mode<synchronous>, transform_indices = @transform_5, window_bounds = array<i64: 128, 128>}, {pipeline_mode = #tpu.pipeline_mode<synchronous>, transform_indices = @transform_6, window_bounds = array<i64: 1, 128>}, {transform_indices = @transform_7, window_bounds = array<i64: 8, 128>}, {transform_indices = @transform_8, window_bounds = array<i64: 8, 128>}, {transform_indices = @transform_9, window_bounds = array<i64: 8, 128>}]} {
    %c0 = arith.constant 0 : index
    %c0_0 = arith.constant 0 : index
    %0 = vector.load %arg1[%c0, %c0_0] : memref<8x128xf32, #tpu.memory_space<vmem>>, vector<8x128xf32>
    %c0_1 = arith.constant 0 : index
    %c0_2 = arith.constant 0 : index
    %1 = vector.load %arg2[%c0_1, %c0_2] : memref<128x128xf32, #tpu.memory_space<vmem>>, vector<128x128xf32>
    %c0_3 = arith.constant 0 : index
    %c0_4 = arith.constant 0 : index
    %2 = vector.load %arg3[%c0_3, %c0_4] : memref<1x128xf32, #tpu.memory_space<vmem>>, vector<1x128xf32>
    %cst = arith.constant dense<0.000000e+00> : vector<8x128xf32>
    %3 = tpu.matmul %0, %1, %cst {dimension_numbers = #tpu.dot_dimension_numbers<[1], [0], [0], [1], [0, 0, 1, 1], [], []>} : vector<8x128xf32>, vector<128x128xf32>, vector<8x128xf32> -> vector<8x128xf32>
    %4 = vector.broadcast %2 : vector<1x128xf32> to vector<8x128xf32>
    %5 = arith.addf %3, %4 : vector<8x128xf32>
    %c0_5 = arith.constant 0 : index
    %c0_6 = arith.constant 0 : index
    %6 = vector.load %arg8[%c0_5, %c0_6] : memref<8x128xf32, #tpu.memory_space<vmem>>, vector<8x128xf32>
    tpu.vector_store %arg8[%c0_5, %c0_6], %5 {strides = array<i32>} : memref<8x128xf32, #tpu.memory_space<vmem>>, vector<8x128xf32>,
    %cst_7 = arith.constant 0.000000e+00 : f32
    %7 = vector.broadcast %cst_7 : f32 to vector<8x128xf32>
    %8 = arith.maximumf %5, %7 : vector<8x128xf32>
    %c0_8 = arith.constant 0 : index
    %c0_9 = arith.constant 0 : index
    %9 = vector.load %arg4[%c0_8, %c0_9] : memref<128x128xf32, #tpu.memory_space<vmem>>, vector<128x128xf32>
    %c0_10 = arith.constant 0 : index
    %c0_11 = arith.constant 0 : index
    %10 = vector.load %arg5[%c0_10, %c0_11] : memref<1x128xf32, #tpu.memory_space<vmem>>, vector<1x128xf32>
    %cst_12 = arith.constant dense<0.000000e+00> : vector<8x128xf32>
    %11 = tpu.matmul %8, %9, %cst_12 {dimension_numbers = #tpu.dot_dimension_numbers<[1], [0], [0], [1], [0, 0, 1, 1], [], []>} : vector<8x128xf32>, vector<128x128xf32>, vector<8x128xf32> -> vector<8x128xf32>
    %12 = vector.broadcast %10 : vector<1x128xf32> to vector<8x128xf32>
    %13 = arith.addf %11, %12 : vector<8x128xf32>
    %c0_13 = arith.constant 0 : index
    %c0_14 = arith.constant 0 : index
    %14 = vector.load %arg9[%c0_13, %c0_14] : memref<8x128xf32, #tpu.memory_space<vmem>>, vector<8x128xf32>
    tpu.vector_store %arg9[%c0_13, %c0_14], %13 {strides = array<i32>} : memref<8x128xf32, #tpu.memory_space<vmem>>, vector<8x128xf32>,
    %cst_15 = arith.constant 0.000000e+00 : f32
    %15 = vector.broadcast %cst_15 : f32 to vector<8x128xf32>
    %16 = arith.maximumf %13, %15 : vector<8x128xf32>
    %c0_16 = arith.constant 0 : index
    %c0_17 = arith.constant 0 : index
    %17 = vector.load %arg6[%c0_16, %c0_17] : memref<128x128xf32, #tpu.memory_space<vmem>>, vector<128x128xf32>
    %c0_18 = arith.constant 0 : index
    %c0_19 = arith.constant 0 : index
    %18 = vector.load %arg7[%c0_18, %c0_19] : memref<1x128xf32, #tpu.memory_space<vmem>>, vector<1x128xf32>
    %cst_20 = arith.constant dense<0.000000e+00> : vector<8x128xf32>
    %19 = tpu.matmul %16, %17, %cst_20 {dimension_numbers = #tpu.dot_dimension_numbers<[1], [0], [0], [1], [0, 0, 1, 1], [], []>} : vector<8x128xf32>, vector<128x128xf32>, vector<8x128xf32> -> vector<8x128xf32>
    %20 = vector.broadcast %18 : vector<1x128xf32> to vector<8x128xf32>
    %21 = arith.addf %19, %20 : vector<8x128xf32>
    %c0_21 = arith.constant 0 : index
    %c0_22 = arith.constant 0 : index
    %22 = vector.load %arg10[%c0_21, %c0_22] : memref<8x128xf32, #tpu.memory_space<vmem>>, vector<8x128xf32>
    tpu.vector_store %arg10[%c0_21, %c0_22], %21 {strides = array<i32>} : memref<8x128xf32, #tpu.memory_space<vmem>>, vector<8x128xf32>,
    return
  }
  func.func @transform_0(%arg0: i32) -> (i32, i32) {
    %c0_i32 = arith.constant 0 : i32
    %c0_i32_0 = arith.constant 0 : i32
    return %arg0, %c0_i32 : i32, i32
  }
  func.func @transform_1(%arg0: i32) -> (i32, i32) {
    %c0_i32 = arith.constant 0 : i32
    %c0_i32_0 = arith.constant 0 : i32
    %c0_i32_1 = arith.constant 0 : i32
    return %c0_i32, %c0_i32_0 : i32, i32
  }
  func.func @transform_2(%arg0: i32) -> (i32, i32) {
    %c0_i32 = arith.constant 0 : i32
    %c0_i32_0 = arith.constant 0 : i32
    %c0_i32_1 = arith.constant 0 : i32
    return %c0_i32, %c0_i32_0 : i32, i32
  }
  func.func @transform_3(%arg0: i32) -> (i32, i32) {
    %c0_i32 = arith.constant 0 : i32
    %c0_i32_0 = arith.constant 0 : i32
    %c0_i32_1 = arith.constant 0 : i32
    return %c0_i32, %c0_i32_0 : i32, i32
  }
  func.func @transform_4(%arg0: i32) -> (i32, i32) {
    %c0_i32 = arith.constant 0 : i32
    %c0_i32_0 = arith.constant 0 : i32
    %c0_i32_1 = arith.constant 0 : i32
    return %c0_i32, %c0_i32_0 : i32, i32
  }
  func.func @transform_5(%arg0: i32) -> (i32, i32) {
    %c0_i32 = arith.constant 0 : i32
    %c0_i32_0 = arith.constant 0 : i32
    %c0_i32_1 = arith.constant 0 : i32
    return %c0_i32, %c0_i32_0 : i32, i32
  }
  func.func @transform_6(%arg0: i32) -> (i32, i32) {
    %c0_i32 = arith.constant 0 : i32
    %c0_i32_0 = arith.constant 0 : i32
    %c0_i32_1 = arith.constant 0 : i32
    return %c0_i32, %c0_i32_0 : i32, i32
  }
  func.func @transform_7(%arg0: i32) -> (i32, i32) {
    %c0_i32 = arith.constant 0 : i32
    %c0_i32_0 = arith.constant 0 : i32
    return %arg0, %c0_i32 : i32, i32
  }
  func.func @transform_8(%arg0: i32) -> (i32, i32) {
    %c0_i32 = arith.constant 0 : i32
    %c0_i32_0 = arith.constant 0 : i32
    return %arg0, %c0_i32 : i32, i32
  }
  func.func @transform_9(%arg0: i32) -> (i32, i32) {
    %c0_i32 = arith.constant 0 : i32
    %c0_i32_0 = arith.constant 0 : i32
    return %arg0, %c0_i32 : i32, i32
  }
}

</mosaic_0001>

<bundles_post_ra>
// kernel: tpu_custom_call.1
= control target key start
LH: loop header
LB: loop body
LE: loop exit
PB: predicated region body
PF: predicated region fallthrough
CT: control target
= control target key end

     0   :  { %15 = vsyncpa [#allocation3], 0  ;;  %s1014_s0 = inlined_call_operand.hbm [shape: f32[8,128], index: 0, kind: input, shape index: {}]   ;;  %s1015_s1 = inlined_call_operand.hbm [shape: f32[128,128], index: 1, kind: input, shape index: {}]   ;;  %s1016_s2 = inlined_call_operand.vmem [shape: f32[1,128], index: 2, kind: input, shape index: {}]   ;;  %s1017_s3 = inlined_call_operand.hbm [shape: f32[128,128], index: 3, kind: input, shape index: {}]   ;;  %s1018_s4 = inlined_call_operand.vmem [shape: f32[1,128], index: 4, kind: input, shape index: {}]   ;;  %s1019_s5 = inlined_call_operand.hbm [shape: f32[128,128], index: 5, kind: input, shape index: {}]   ;;  %s1020_s6 = inlined_call_operand.vmem [shape: f32[1,128], index: 6, kind: input, shape index: {}]   ;;  %s1021_s7 = inlined_call_operand.hbm [shape: f32[8,128], index: 7, kind: output, shape index: {0}]   ;;  %s1022_s8 = inlined_call_operand.hbm [shape: f32[8,128], index: 8, kind: output, shape index: {1}]   ;;  %s1023_s9 = inlined_call_operand.hbm [shape: f32[8,128], index: 9, kind: output, shape index: {2}]  }
   0x1   :  { %16 = vsyncpa [#allocation6], 0 }
   0x2   :  { %17 = vsyncpa [#allocation9], 0 }
   0x3   :  { %18 = vsyncpa [#allocation4], 0 }
   0x4   :  { %19 = vsyncpa [#allocation12], 0  ;;  %s820_s30 = smov [#allocation5]   ;;  %s656_s13 = scalar_lea.hbm %s1015_s1, 2048 }
   0x5   :  { %s35_s10 = sshll.u32 %s820_s30, 4  ;;  %p657_p0 = scmp.ne.s32.totalorder %s1015_s1, %s656_s13  ;;  %s36_s10 = int_to_ptr.vmem [resolvable:$true] %s35_s10 }
   0x6   :  { %p660_p1 = scmp.lt.u32.totalorder %s656_s13, %s1015_s1 }
   0x8   :  { %p662_p2 = pnand %p660_p1, %p657_p0 }
   0xa   :  { %665 = shalt.err (!%p662_p2)
}
   0xb   :  { %s666_s18 = scalar_lea.vmem %s36_s10, 2048  ;;  %p671_p4 = scmp.lt.s32.totalorder %s36_s10, %s36_s10 }
   0xc   :  { %p667_p3 = scmp.ne.s32.totalorder %s36_s10, %s666_s18  ;;  %p672_p5 = scmp.lt.s32.totalorder %s666_s18, %s666_s18 }
   0xe   :  { %p673_p6 = por %p672_p5, %p671_p4 }
  0x10   :  { %p674_p7 = pnand %p673_p6, %p667_p3 }
  0x12   :  { %677 = shalt.err (!%p674_p7)
}
  0x13   :  { %s821_s19 = smov 128   ;;  %s822_s20 = smov 8  }
  0x14   :  { %41 = dma.hbm_to_vmem [thread:$0]  %s1015_s1, 2048, %s36_s10, [#allocation6], %s821_s19, %s821_s19, %s822_s20  }
  0x15   :  { %s823_s23 = smov [#allocation2]   ;;  %s824_s25 = smov [#allocation7]  }
  0x16   :  { %s26_s24 = sshll.u32 %s823_s23, 4  ;;  %s49_s26 = sshll.u32 %s824_s25, 4  ;;  %s27_s24 = int_to_ptr.vmem [resolvable:$true] %s26_s24  ;;  %s50_s26 = int_to_ptr.vmem [resolvable:$true] %s49_s26 }
  0x17   :  { %s678_s29 = scalar_lea.hbm %s1014_s0, 128 }
  0x18   :  { %p679_p8 = scmp.ne.s32.totalorder %s1014_s0, %s678_s29  ;;  %p682_p9 = scmp.lt.u32.totalorder %s678_s29, %s1014_s0 }
  0x1a   :  { %p684_p10 = pnand %p682_p9, %p679_p8 }
  0x1c   :  { %687 = shalt.err (!%p684_p10)
}
  0x1d   :  { %s688_s1 = scalar_lea.vmem %s27_s24, 128  ;;  %p693_p12 = scmp.lt.s32.totalorder %s27_s24, %s27_s24 }
  0x1e   :  { %p689_p11 = scmp.ne.s32.totalorder %s27_s24, %s688_s1  ;;  %p694_p13 = scmp.lt.s32.totalorder %s688_s1, %s688_s1 }
  0x20   :  { %p695_p0 = por %p694_p13, %p693_p12 }
  0x22   :  { %p696_p1 = pnand %p695_p0, %p689_p11 }
  0x24   :  { %699 = shalt.err (!%p696_p1)
}
  0x25   :  { %29 = dma.hbm_to_vmem [thread:$0]  %s1014_s0, 128, %s27_s24, [#allocation3]  }
  0x26   :  { %s700_s17 = scalar_lea.hbm %s1017_s3, 2048 }
  0x27   :  { %p701_p2 = scmp.ne.s32.totalorder %s1017_s3, %s700_s17  ;;  %p704_p3 = scmp.lt.u32.totalorder %s700_s17, %s1017_s3 }
  0x29   :  { %p706_p4 = pnand %p704_p3, %p701_p2 }
  0x2b   :  { %709 = shalt.err (!%p706_p4)
}
  0x2c   :  { %s710_s25 = scalar_lea.vmem %s50_s26, 2048  ;;  %p715_p6 = scmp.lt.s32.totalorder %s50_s26, %s50_s26 }
  0x2d   :  { %p711_p5 = scmp.ne.s32.totalorder %s50_s26, %s710_s25  ;;  %p716_p7 = scmp.lt.s32.totalorder %s710_s25, %s710_s25 }
  0x2f   :  { %p717_p8 = por %p716_p7, %p715_p6 }
  0x31   :  { %p718_p9 = pnand %p717_p8, %p711_p5 }
  0x33   :  { %721 = shalt.err (!%p718_p9)
}
  0x34   :  { %55 = dma.hbm_to_vmem [thread:$0]  %s1017_s3, 2048, %s50_s26, [#allocation6], %s821_s19, %s821_s19, %s822_s20  }
  0x35   :  { %s825_s27 = smov [#allocation8]   ;;  %s722_s11 = scalar_lea.hbm %s1019_s5, 2048 }
  0x36   :  { %s63_s28 = sshll.u32 %s825_s27, 4  ;;  %p723_p10 = scmp.ne.s32.totalorder %s1019_s5, %s722_s11  ;;  %s64_s28 = int_to_ptr.vmem [resolvable:$true] %s63_s28 }
  0x37   :  { %p726_p11 = scmp.lt.u32.totalorder %s722_s11, %s1019_s5 }
  0x39   :  { %p728_p12 = pnand %p726_p11, %p723_p10 }
  0x3b   :  { %731 = shalt.err (!%p728_p12)
}
  0x3c   :  { %s732_s14 = scalar_lea.vmem %s64_s28, 2048  ;;  %p737_p0 = scmp.lt.s32.totalorder %s64_s28, %s64_s28 }
  0x3d   :  { %p733_p13 = scmp.ne.s32.totalorder %s64_s28, %s732_s14  ;;  %p738_p1 = scmp.lt.s32.totalorder %s732_s14, %s732_s14 }
  0x3f   :  { %p739_p2 = por %p738_p1, %p737_p0 }
  0x41   :  { %p740_p3 = pnand %p739_p2, %p733_p13 }
  0x43   :  { %743 = shalt.err (!%p740_p3)
}
  0x44   :  { %69 = dma.hbm_to_vmem [thread:$0]  %s1019_s5, 2048, %s64_s28, [#allocation9], %s821_s19, %s821_s19, %s822_s20  }
  0x45   :  { %810 = dma.done.wait [#allocation3], 128  }
  0x46   :  { %811 = vsyncadd [#allocation3], 4294967168 }
  0x47   :  { %812 = dma.done.wait [#allocation6], 4096  }
  0x48   :  { %813 = vsyncadd [#allocation6], 4294963200 }
  0x49   :  { %814 = dma.done.wait [#allocation9], 2048  }
  0x4a   :  { %815 = vsyncadd [#allocation9], 4294965248  ;;  %v826_v0 = vmov 0.0|0.0   ;;  %vm827_vm0 = vmmov 0   ;;  %v828_v1 = vmov 0.0   ;;  %v85_v2 = vld [vmem:[#allocation5] sm:$0xff] }
  0x4b   :  { %572 = vmatprep.subr.bf16.mxu0 %v826_v0  ;;  %499 = vmatprep.mubr.msk.f32.mxu0 %vm827_vm0, %v828_v1  ;;  %v86_v3 = vld [vmem:[#allocation5 + $0x8] sm:$0xff]  ;;  %v87_v4 = vld [vmem:[#allocation5 + $0x10] sm:$0xff]  ;;  %v88_v6 = vld [vmem:[#allocation5 + $0x18] sm:$0xff]  ;;  %s830_s17 = smov [#allocation10]  }
  0x4c   :  { %596 = vmatprep.subr.bf16.mxu1 %v826_v0  ;;  %534 = vmatprep.mubr.msk.f32.mxu1 %vm827_vm0, %v828_v1  ;;  %v573_v5 = vpack.c.bf16 %v86_v3, %v85_v2  ;;  %v576_v7 = vpack.c.bf16 %v88_v6, %v87_v4  ;;  %v89_v8 = vld [vmem:[#allocation5 + $0x20] sm:$0xff]  ;;  %v90_v9 = vld [vmem:[#allocation5 + $0x28] sm:$0xff]  ;;  %v182_v12 = vld [vmem:[#allocation7 + $0x10] sm:$0xff]  ;;  %s375_s18 = sshll.u32 %s830_s17, 4  ;;  %s376_s18 = int_to_ptr.vmem [resolvable:$true] %s375_s18 }
  0x4d   :  { %v180_v10 = vld [vmem:[#allocation7] sm:$0xff]  ;;  %v181_v11 = vld [vmem:[#allocation7 + $0x8] sm:$0xff]  ;;  %v183_v13 = vld [vmem:[#allocation7 + $0x18] sm:$0xff]  ;;  %v579_v14 = vpack.c.bf16 %v90_v9, %v89_v8 }
  0x4e   :  { %574 = vmatpush3.bf16.msra.mxu0 %v573_v5  ;;  %v597_v15 = vpack.c.bf16 %v181_v11, %v180_v10  ;;  %v91_v16 = vld [vmem:[#allocation5 + $0x30] sm:$0xff]  ;;  %v92_v17 = vld [vmem:[#allocation5 + $0x38] sm:$0xff]  ;;  %v600_v18 = vpack.c.bf16 %v183_v13, %v182_v12  ;;  %v184_v19 = vld [vmem:[#allocation7 + $0x20] sm:$0xff] }
  0x4f   :  { %575 = vmatprep.subr.bf16.mxu0 %v826_v0  ;;  %v185_v20 = vld [vmem:[#allocation7 + $0x28] sm:$0xff]  ;;  %v582_v21 = vpack.c.bf16 %v92_v17, %v91_v16  ;;  %v93_v22 = vld [vmem:[#allocation5 + $0x40] sm:$0xff]  ;;  %v186_v25 = vld [vmem:[#allocation7 + $0x30] sm:$0xff] }
  0x50   :  { %598 = vmatpush3.bf16.msra.mxu1 %v597_v15  ;;  %v94_v23 = vld [vmem:[#allocation5 + $0x48] sm:$0xff]  ;;  %v603_v24 = vpack.c.bf16 %v185_v20, %v184_v19  ;;  %v187_v26 = vld [vmem:[#allocation7 + $0x38] sm:$0xff]  ;;  %v95_v28 = vld [vmem:[#allocation5 + $0x50] sm:$0xff] }
  0x51   :  { %599 = vmatprep.subr.bf16.mxu1 %v826_v0  ;;  %v585_v27 = vpack.c.bf16 %v94_v23, %v93_v22  ;;  %v96_v29 = vld [vmem:[#allocation5 + $0x58] sm:$0xff]  ;;  %v606_v30 = vpack.c.bf16 %v187_v26, %v186_v25  ;;  %v188_v31 = vld [vmem:[#allocation7 + $0x40] sm:$0xff]  ;;  %v189_v32 = vld [vmem:[#allocation7 + $0x48] sm:$0xff] }
  0x52   :  { %577 = vmatpush3.bf16.msra.mxu0 %v576_v7  ;;  %v588_v33 = vpack.c.bf16 %v96_v29, %v95_v28  ;;  %v97_v34 = vld [vmem:[#allocation5 + $0x60] sm:$0xff]  ;;  %v98_v35 = vld [vmem:[#allocation5 + $0x68] sm:$0xff]  ;;  %v609_v36 = vpack.c.bf16 %v189_v32, %v188_v31  ;;  %v190_v37 = vld [vmem:[#allocation7 + $0x50] sm:$0xff] }
  0x53   :  { %578 = vmatprep.subr.bf16.mxu0 %v826_v0  ;;  %v191_v38 = vld [vmem:[#allocation7 + $0x58] sm:$0xff]  ;;  %v591_v39 = vpack.c.bf16 %v98_v35, %v97_v34  ;;  %v99_v40 = vld [vmem:[#allocation5 + $0x70] sm:$0xff]  ;;  %v192_v43 = vld [vmem:[#allocation7 + $0x60] sm:$0xff] }
  0x54   :  { %601 = vmatpush3.bf16.msra.mxu1 %v600_v18  ;;  %v100_v41 = vld [vmem:[#allocation5 + $0x78] sm:$0xff]  ;;  %v612_v42 = vpack.c.bf16 %v191_v38, %v190_v37  ;;  %v193_v44 = vld [vmem:[#allocation7 + $0x68] sm:$0xff]  ;;  %v194_v48 = vld [vmem:[#allocation7 + $0x70] sm:$0xff] }
  0x55   :  { %602 = vmatprep.subr.bf16.mxu1 %v826_v0  ;;  %v594_v45 = vpack.c.bf16 %v100_v41, %v99_v40  ;;  %v615_v46 = vpack.c.bf16 %v193_v44, %v192_v43  ;;  %v84_v47 = vld [vmem:[#allocation2] sm:$0xff]  ;;  %v275_v51 = vld [vmem:[#allocation8] sm:$0xff]  ;;  %v276_v52 = vld [vmem:[#allocation8 + $0x8] sm:$0xff] }
  0x56   :  { %580 = vmatpush3.bf16.msra.mxu0 %v579_v14  ;;  %v195_v49 = vld [vmem:[#allocation7 + $0x78] sm:$0xff]  ;;  %v277_v53 = vld [vmem:[#allocation8 + $0x10] sm:$0xff]  ;;  %v621_v54 = vpack.c.bf16 %v276_v52, %v275_v51  ;;  %v279_v57 = vld [vmem:[#allocation8 + $0x20] sm:$0xff] }
  0x57   :  { %581 = vmatprep.subr.bf16.mxu0 %v826_v0  ;;  %v618_v50 = vpack.c.bf16 %v195_v49, %v194_v48  ;;  %v278_v55 = vld [vmem:[#allocation8 + $0x18] sm:$0xff]  ;;  %v280_v58 = vld [vmem:[#allocation8 + $0x28] sm:$0xff]  ;;  %v281_v60 = vld [vmem:[#allocation8 + $0x30] sm:$0xff] }
  0x58   :  { %604 = vmatpush3.bf16.msra.mxu1 %v603_v24  ;;  %v624_v56 = vpack.c.bf16 %v278_v55, %v277_v53  ;;  %v627_v59 = vpack.c.bf16 %v280_v58, %v279_v57  ;;  %v282_v61 = vld [vmem:[#allocation8 + $0x38] sm:$0xff]  ;;  %v283_v63 = vld [vmem:[#allocation8 + $0x40] sm:$0xff]  ;;  %v285_v3 = vld [vmem:[#allocation8 + $0x50] sm:$0xff] }
  0x59   :  { %605 = vmatprep.subr.bf16.mxu1 %v826_v0  ;;  %v630_v62 = vpack.c.bf16 %v282_v61, %v281_v60  ;;  %v286_v4 = vld [vmem:[#allocation8 + $0x58] sm:$0xff]  ;;  %v287_v6 = vld [vmem:[#allocation8 + $0x60] sm:$0xff]  ;;  %v288_v7 = vld [vmem:[#allocation8 + $0x68] sm:$0xff] }
  0x5a   :  { %583 = vmatpush3.bf16.msra.mxu0 %v582_v21  ;;  %v636_v5 = vpack.c.bf16 %v286_v4, %v285_v3  ;;  %v639_v8 = vpack.c.bf16 %v288_v7, %v287_v6  ;;  %v413_v9 = vld [vmem:[%s1016_s2] ss:$0 sm:$0xff]  ;;  %v289_v14 = vld [vmem:[#allocation8 + $0x70] sm:$0xff]  ;;  %s829_s2 = smov [#allocation11]  }
  0x5b   :  { %584 = vmatprep.subr.bf16.mxu0 %v826_v0  ;;  %v290_v15 = vld [vmem:[#allocation8 + $0x78] sm:$0xff]  ;;  %s385_s16 = sshll.u32 %s829_s2, 4  ;;  %s386_s16 = int_to_ptr.vmem [resolvable:$true] %s385_s16 }
  0x5c   :  { %607 = vmatpush3.bf16.msra.mxu1 %v606_v30  ;;  %v642_v16 = vpack.c.bf16 %v290_v15, %v289_v14  ;;  %v414_v17 = vld [vmem:[%s1018_s4] ss:$0 sm:$0xff]  ;;  %s744_s21 = scalar_lea.vmem %s386_s16, 128  ;;  %p749_p5 = scmp.lt.s32.totalorder %s386_s16, %s386_s16 }
  0x5d   :  { %608 = vmatprep.subr.bf16.mxu1 %v826_v0  ;;  %p745_p4 = scmp.ne.s32.totalorder %s386_s16, %s744_s21  ;;  %p750_p6 = scmp.lt.s32.totalorder %s744_s21, %s744_s21 }
  0x5e   :  { %586 = vmatpush3.bf16.msra.mxu0 %v585_v27 }
  0x5f   :  { %587 = vmatprep.subr.bf16.mxu0 %v826_v0  ;;  %p751_p7 = por %p750_p6, %p749_p5 }
  0x60   :  { %610 = vmatpush3.bf16.msra.mxu1 %v609_v36 }
  0x61   :  { %611 = vmatprep.subr.bf16.mxu1 %v826_v0  ;;  %p752_p8 = pnand %p751_p7, %p745_p4 }
  0x62   :  { %589 = vmatpush3.bf16.msra.mxu0 %v588_v33 }
  0x63   :  { %590 = vmatprep.subr.bf16.mxu0 %v826_v0 }
  0x64   :  { %613 = vmatpush3.bf16.msra.mxu1 %v612_v42 }
  0x65   :  { %614 = vmatprep.subr.bf16.mxu1 %v826_v0 }
  0x66   :  { %592 = vmatpush3.bf16.msra.mxu0 %v591_v39 }
  0x67   :  { %593 = vmatprep.subr.bf16.mxu0 %v826_v0 }
  0x68   :  { %616 = vmatpush3.bf16.msra.mxu1 %v615_v46 }
  0x69   :  { %617 = vmatprep.subr.bf16.mxu1 %v826_v0 }
  0x6a   :  { %595 = vmatpush3.bf16.msra.mxu0 %v594_v45 }
  0x6b   :  { %620 = vmatprep.subr.bf16.mxu0 %v826_v0 }
  0x6c   :  { %619 = vmatpush3.bf16.msra.mxu1 %v618_v50 }
  0x6d   :  { %500 = vmatmul.mubr.f32.vlgmr.msra.gmra.mrb[0].mxu0 %v84_v47 }
  0x6e   :  { %569 = vmatprep.mubr.msk.f32.mxu0 %vm827_vm0, %v828_v1  ;;  %622 = vmatpush3.bf16.msra.mxu0 %v621_v54  ;;  %v284_v1 = vld [vmem:[#allocation8 + $0x48] sm:$0xff] }
  0x6f   :  { %623 = vmatprep.subr.bf16.mxu0 %v826_v0  ;;  %v633_v2 = vpack.c.bf16 %v284_v1, %v283_v63 }
  0x72   :  { %625 = vmatpush3.bf16.msra.mxu0 %v624_v56 }
  0x73   :  { %626 = vmatprep.subr.bf16.mxu0 %v826_v0 }
  0x76   :  { %628 = vmatpush3.bf16.msra.mxu0 %v627_v59 }
  0x77   :  { %629 = vmatprep.subr.bf16.mxu0 %v826_v0 }
  0x7a   :  { %631 = vmatpush3.bf16.msra.mxu0 %v630_v62 }
  0x7b   :  { %632 = vmatprep.subr.bf16.mxu0 %v826_v0 }
  0x7e   :  { %634 = vmatpush3.bf16.msra.mxu0 %v633_v2 }
  0x7f   :  { %635 = vmatprep.subr.bf16.mxu0 %v826_v0 }
  0x82   :  { %637 = vmatpush3.bf16.msra.mxu0 %v636_v5 }
  0x83   :  { %638 = vmatprep.subr.bf16.mxu0 %v826_v0 }
  0x86   :  { %640 = vmatpush3.bf16.msra.mxu0 %v639_v8 }
  0x87   :  { %641 = vmatprep.subr.bf16.mxu0 %v826_v0 }
  0x8a   :  { %643 = vmatpush3.bf16.msra.mxu0 %v642_v16 }
 0x140   :  { %v174_v10 = vpop.f32.mrb[0].mxu0 }
 0x141   :  { %v175_v11 = vadd.f32 %v413_v9, %v174_v10  ;;  %v501_v12 = vpop.f32.mrb[1].mxu0 }
 0x143   :  { %v179_v13 = vmax.f32 %v175_v11, 0.0  ;;  %178 = vst [vmem:[#allocation10] sm:$0xff] %v175_v11 }
 0x145   :  { %535 = vmatmul.mubr.f32.vlgmr.msra.gmra.mrb[0].mxu1 %v179_v13 }
 0x218   :  { %v269_v18 = vpop.f32.mrb[0].mxu1 }
 0x219   :  { %v270_v0 = vadd.f32 %v414_v17, %v269_v18  ;;  %v536_v19 = vpop.f32.mrb[1].mxu1 }
 0x21b   :  { %v274_v20 = vmax.f32 %v270_v0, 0.0  ;;  %273 = vst [vmem:[#allocation11] sm:$0xff] %v270_v0 }
 0x21d   :  { %570 = vmatmul.mubr.f32.vlgmr.msra.gmra.mrb[2].mxu0 %v274_v20 }
 0x21e   :  { %755 = shalt.err (!%p752_p8)
}
 0x21f   :  { %s756_s23 = scalar_lea.hbm %s1022_s8, 128 }
 0x220   :  { %p757_p9 = scmp.ne.s32.totalorder %s1022_s8, %s756_s23  ;;  %p760_p10 = scmp.lt.u32.totalorder %s756_s23, %s1022_s8 }
 0x222   :  { %p762_p11 = pnand %p760_p10, %p757_p9 }
 0x224   :  { %765 = shalt.err (!%p762_p11)
}
 0x225   :  { %388 = dma.vmem_to_hbm [thread:$0]  %s386_s16, 128, %s1022_s8, [#allocation12]  }
 0x226   :  { %s766_s30 = scalar_lea.vmem %s376_s18, 128  ;;  %p771_p13 = scmp.lt.s32.totalorder %s376_s18, %s376_s18 }
 0x227   :  { %p767_p12 = scmp.ne.s32.totalorder %s376_s18, %s766_s30  ;;  %p772_p0 = scmp.lt.s32.totalorder %s766_s30, %s766_s30 }
 0x229   :  { %p773_p1 = por %p772_p0, %p771_p13 }
 0x22b   :  { %p774_p2 = pnand %p773_p1, %p767_p12 }
 0x22d   :  { %777 = shalt.err (!%p774_p2)
}
 0x22e   :  { %s778_s13 = scalar_lea.hbm %s1021_s7, 128 }
 0x22f   :  { %p779_p3 = scmp.ne.s32.totalorder %s1021_s7, %s778_s13  ;;  %p782_p4 = scmp.lt.u32.totalorder %s778_s13, %s1021_s7 }
 0x231   :  { %p784_p5 = pnand %p782_p4, %p779_p3 }
 0x233   :  { %787 = shalt.err (!%p784_p5)
}
 0x234   :  { %378 = dma.vmem_to_hbm [thread:$0]  %s376_s18, 128, %s1021_s7, [#allocation4]   ;;  %v415_v21 = vld [vmem:[%s1020_s6] ss:$0 sm:$0xff] }
 0x235   :  { %s831_s20 = smov [#allocation13]  }
 0x236   :  { %s395_s15 = sshll.u32 %s831_s20, 4  ;;  %s396_s15 = int_to_ptr.vmem [resolvable:$true] %s395_s15 }
 0x237   :  { %s788_s2 = scalar_lea.vmem %s396_s15, 128  ;;  %p793_p7 = scmp.lt.s32.totalorder %s396_s15, %s396_s15 }
 0x238   :  { %p789_p6 = scmp.ne.s32.totalorder %s396_s15, %s788_s2  ;;  %p794_p8 = scmp.lt.s32.totalorder %s788_s2, %s788_s2 }
 0x23a   :  { %p795_p9 = por %p794_p8, %p793_p7 }
 0x23c   :  { %p796_p10 = pnand %p795_p9, %p789_p6 }
 0x2f0   :  { %v364_v22 = vpop.f32.mrb[2].mxu0 }
 0x2f1   :  { %v365_v23 = vadd.f32 %v415_v21, %v364_v22  ;;  %v571_v24 = vpop.f32.mrb[3].mxu0 }
 0x2f3   :  { %368 = vst [vmem:[#allocation13] sm:$0xff] %v365_v23 }
 0x2f4   :  { %799 = shalt.err (!%p796_p10)
}
 0x2f5   :  { %s800_s17 = scalar_lea.hbm %s1023_s9, 128 }
 0x2f6   :  { %p801_p11 = scmp.ne.s32.totalorder %s1023_s9, %s800_s17  ;;  %p804_p12 = scmp.lt.u32.totalorder %s800_s17, %s1023_s9 }
 0x2f8   :  { %p806_p13 = pnand %p804_p12, %p801_p11 }
 0x2fa   :  { %809 = shalt.err (!%p806_p13)
}
 0x2fb   :  { %398 = dma.vmem_to_hbm [thread:$0]  %s396_s15, 128, %s1023_s9, [#allocation12]  }
 0x2fc   :  { %816 = dma.done.wait [#allocation4], 128  }
 0x2fd   :  { %817 = vsyncadd [#allocation4], 4294967168 }
 0x2fe   :  { %818 = dma.done.wait [#allocation12], 256  }
 0x2ff   :  { %819 = vsyncadd [#allocation12], 4294967040 }
 0x300   :  { %408 = vsyncpa [#allocation3], 1 }
 0x301   :  { %409 = vsyncpa [#allocation6], 1 }
 0x302   :  { %410 = vsyncpa [#allocation9], 1 }
 0x303   :  { %411 = vsyncpa [#allocation4], 1 }
 0x304   :  { %412 = vsyncpa [#allocation12], 1 }

// kernel: tpu_custom_call.1
= control target key start
LH: loop header
LB: loop body
LE: loop exit
PB: predicated region body
PF: predicated region fallthrough
CT: control target
= control target key end

     0   :  { %15 = vsyncpa [#allocation3], 0  ;;  %s1014_s0 = inlined_call_operand.hbm [shape: f32[8,128], index: 0, kind: input, shape index: {}]   ;;  %s1015_s1 = inlined_call_operand.hbm [shape: f32[128,128], index: 1, kind: input, shape index: {}]   ;;  %s1016_s2 = inlined_call_operand.vmem [shape: f32[1,128], index: 2, kind: input, shape index: {}]   ;;  %s1017_s3 = inlined_call_operand.hbm [shape: f32[128,128], index: 3, kind: input, shape index: {}]   ;;  %s1018_s4 = inlined_call_operand.vmem [shape: f32[1,128], index: 4, kind: input, shape index: {}]   ;;  %s1019_s5 = inlined_call_operand.hbm [shape: f32[128,128], index: 5, kind: input, shape index: {}]   ;;  %s1020_s6 = inlined_call_operand.vmem [shape: f32[1,128], index: 6, kind: input, shape index: {}]   ;;  %s1021_s7 = inlined_call_operand.hbm [shape: f32[8,128], index: 7, kind: output, shape index: {0}]   ;;  %s1022_s8 = inlined_call_operand.hbm [shape: f32[8,128], index: 8, kind: output, shape index: {1}]   ;;  %s1023_s9 = inlined_call_operand.hbm [shape: f32[8,128], index: 9, kind: output, shape index: {2}]  }
   0x1   :  { %16 = vsyncpa [#allocation6], 0 }
   0x2   :  { %17 = vsyncpa [#allocation9], 0 }
   0x3   :  { %18 = vsyncpa [#allocation4], 0 }
   0x4   :  { %19 = vsyncpa [#allocation12], 0  ;;  %s820_s30 = smov [#allocation5]   ;;  %s656_s13 = scalar_lea.hbm %s1015_s1, 2048 }
   0x5   :  { %s35_s10 = sshll.u32 %s820_s30, 4  ;;  %p657_p0 = scmp.ne.s32.totalorder %s1015_s1, %s656_s13  ;;  %s36_s10 = int_to_ptr.vmem [resolvable:$true] %s35_s10 }
   0x6   :  { %p660_p1 = scmp.lt.u32.totalorder %s656_s13, %s1015_s1 }
   0x8   :  { %p662_p2 = pnand %p660_p1, %p657_p0 }
   0xa   :  { %665 = shalt.err (!%p662_p2)
}
   0xb   :  { %s666_s18 = scalar_lea.vmem %s36_s10, 2048  ;;  %p671_p4 = scmp.lt.s32.totalorder %s36_s10, %s36_s10 }
   0xc   :  { %p667_p3 = scmp.ne.s32.totalorder %s36_s10, %s666_s18  ;;  %p672_p5 = scmp.lt.s32.totalorder %s666_s18, %s666_s18 }
   0xe   :  { %p673_p6 = por %p672_p5, %p671_p4 }
  0x10   :  { %p674_p7 = pnand %p673_p6, %p667_p3 }
  0x12   :  { %677 = shalt.err (!%p674_p7)
}
  0x13   :  { %s821_s19 = smov 128   ;;  %s822_s20 = smov 8  }
  0x14   :  { %41 = dma.hbm_to_vmem [thread:$0]  %s1015_s1, 2048, %s36_s10, [#allocation6], %s821_s19, %s821_s19, %s822_s20  }
  0x15   :  { %s823_s23 = smov [#allocation2]   ;;  %s824_s25 = smov [#allocation7]  }
  0x16   :  { %s26_s24 = sshll.u32 %s823_s23, 4  ;;  %s49_s26 = sshll.u32 %s824_s25, 4  ;;  %s27_s24 = int_to_ptr.vmem [resolvable:$true] %s26_s24  ;;  %s50_s26 = int_to_ptr.vmem [resolvable:$true] %s49_s26 }
  0x17   :  { %s678_s29 = scalar_lea.hbm %s1014_s0, 128 }
  0x18   :  { %p679_p8 = scmp.ne.s32.totalorder %s1014_s0, %s678_s29  ;;  %p682_p9 = scmp.lt.u32.totalorder %s678_s29, %s1014_s0 }
  0x1a   :  { %p684_p10 = pnand %p682_p9, %p679_p8 }
  0x1c   :  { %687 = shalt.err (!%p684_p10)
}
  0x1d   :  { %s688_s1 = scalar_lea.vmem %s27_s24, 128  ;;  %p693_p12 = scmp.lt.s32.totalorder %s27_s24, %s27_s24 }
  0x1e   :  { %p689_p11 = scmp.ne.s32.totalorder %s27_s24, %s688_s1  ;;  %p694_p13 = scmp.lt.s32.totalorder %s688_s1, %s688_s1 }
  0x20   :  { %p695_p0 = por %p694_p13, %p693_p12 }
  0x22   :  { %p696_p1 = pnand %p695_p0, %p689_p11 }
  0x24   :  { %699 = shalt.err (!%p696_p1)
}
  0x25   :  { %29 = dma.hbm_to_vmem [thread:$0]  %s1014_s0, 128, %s27_s24, [#allocation3]  }
  0x26   :  { %s700_s17 = scalar_lea.hbm %s1017_s3, 2048 }
  0x27   :  { %p701_p2 = scmp.ne.s32.totalorder %s1017_s3, %s700_s17  ;;  %p704_p3 = scmp.lt.u32.totalorder %s700_s17, %s1017_s3 }
  0x29   :  { %p706_p4 = pnand %p704_p3, %p701_p2 }
  0x2b   :  { %709 = shalt.err (!%p706_p4)
}
  0x2c   :  { %s710_s25 = scalar_lea.vmem %s50_s26, 2048  ;;  %p715_p6 = scmp.lt.s32.totalorder %s50_s26, %s50_s26 }
  0x2d   :  { %p711_p5 = scmp.ne.s32.totalorder %s50_s26, %s710_s25  ;;  %p716_p7 = scmp.lt.s32.totalorder %s710_s25, %s710_s25 }
  0x2f   :  { %p717_p8 = por %p716_p7, %p715_p6 }
  0x31   :  { %p718_p9 = pnand %p717_p8, %p711_p5 }
  0x33   :  { %721 = shalt.err (!%p718_p9)
}
  0x34   :  { %55 = dma.hbm_to_vmem [thread:$0]  %s1017_s3, 2048, %s50_s26, [#allocation6], %s821_s19, %s821_s19, %s822_s20  }
  0x35   :  { %s825_s27 = smov [#allocation8]   ;;  %s722_s11 = scalar_lea.hbm %s1019_s5, 2048 }
  0x36   :  { %s63_s28 = sshll.u32 %s825_s27, 4  ;;  %p723_p10 = scmp.ne.s32.totalorder %s1019_s5, %s722_s11  ;;  %s64_s28 = int_to_ptr.vmem [resolvable:$true] %s63_s28 }
  0x37   :  { %p726_p11 = scmp.lt.u32.totalorder %s722_s11, %s1019_s5 }
  0x39   :  { %p728_p12 = pnand %p726_p11, %p723_p10 }
  0x3b   :  { %731 = shalt.err (!%p728_p12)
}
  0x3c   :  { %s732_s14 = scalar_lea.vmem %s64_s28, 2048  ;;  %p737_p0 = scmp.lt.s32.totalorder %s64_s28, %s64_s28 }
  0x3d   :  { %p733_p13 = scmp.ne.s32.totalorder %s64_s28, %s732_s14  ;;  %p738_p1 = scmp.lt.s32.totalorder %s732_s14, %s732_s14 }
  0x3f   :  { %p739_p2 = por %p738_p1, %p737_p0 }
  0x41   :  { %p740_p3 = pnand %p739_p2, %p733_p13 }
  0x43   :  { %743 = shalt.err (!%p740_p3)
}
  0x44   :  { %69 = dma.hbm_to_vmem [thread:$0]  %s1019_s5, 2048, %s64_s28, [#allocation9], %s821_s19, %s821_s19, %s822_s20  }
  0x45   :  { %810 = dma.done.wait [#allocation3], 128  }
  0x46   :  { %811 = vsyncadd [#allocation3], 4294967168 }
  0x47   :  { %812 = dma.done.wait [#allocation6], 4096  }
  0x48   :  { %813 = vsyncadd [#allocation6], 4294963200 }
  0x49   :  { %814 = dma.done.wait [#allocation9], 2048  }
  0x4a   :  { %815 = vsyncadd [#allocation9], 4294965248  ;;  %v826_v0 = vmov 0.0|0.0   ;;  %vm827_vm0 = vmmov 0   ;;  %v828_v1 = vmov 0.0   ;;  %v85_v2 = vld [vmem:[#allocation5] sm:$0xff] }
  0x4b   :  { %572 = vmatprep.subr.bf16.mxu0 %v826_v0  ;;  %499 = vmatprep.mubr.msk.f32.mxu0 %vm827_vm0, %v828_v1  ;;  %v86_v3 = vld [vmem:[#allocation5 + $0x8] sm:$0xff]  ;;  %v87_v4 = vld [vmem:[#allocation5 + $0x10] sm:$0xff]  ;;  %v88_v6 = vld [vmem:[#allocation5 + $0x18] sm:$0xff]  ;;  %s830_s17 = smov [#allocation10]  }
  0x4c   :  { %596 = vmatprep.subr.bf16.mxu1 %v826_v0  ;;  %534 = vmatprep.mubr.msk.f32.mxu1 %vm827_vm0, %v828_v1  ;;  %v573_v5 = vpack.c.bf16 %v86_v3, %v85_v2  ;;  %v576_v7 = vpack.c.bf16 %v88_v6, %v87_v4  ;;  %v89_v8 = vld [vmem:[#allocation5 + $0x20] sm:$0xff]  ;;  %v90_v9 = vld [vmem:[#allocation5 + $0x28] sm:$0xff]  ;;  %v182_v12 = vld [vmem:[#allocation7 + $0x10] sm:$0xff]  ;;  %s375_s18 = sshll.u32 %s830_s17, 4  ;;  %s376_s18 = int_to_ptr.vmem [resolvable:$true] %s375_s18 }
  0x4d   :  { %v180_v10 = vld [vmem:[#allocation7] sm:$0xff]  ;;  %v181_v11 = vld [vmem:[#allocation7 + $0x8] sm:$0xff]  ;;  %v183_v13 = vld [vmem:[#allocation7 + $0x18] sm:$0xff]  ;;  %v579_v14 = vpack.c.bf16 %v90_v9, %v89_v8 }
  0x4e   :  { %574 = vmatpush3.bf16.msra.mxu0 %v573_v5  ;;  %v597_v15 = vpack.c.bf16 %v181_v11, %v180_v10  ;;  %v91_v16 = vld [vmem:[#allocation5 + $0x30] sm:$0xff]  ;;  %v92_v17 = vld [vmem:[#allocation5 + $0x38] sm:$0xff]  ;;  %v600_v18 = vpack.c.bf16 %v183_v13, %v182_v12  ;;  %v184_v19 = vld [vmem:[#allocation7 + $0x20] sm:$0xff] }
  0x4f   :  { %575 = vmatprep.subr.bf16.mxu0 %v826_v0  ;;  %v185_v20 = vld [vmem:[#allocation7 + $0x28] sm:$0xff]  ;;  %v582_v21 = vpack.c.bf16 %v92_v17, %v91_v16  ;;  %v93_v22 = vld [vmem:[#allocation5 + $0x40] sm:$0xff]  ;;  %v186_v25 = vld [vmem:[#allocation7 + $0x30] sm:$0xff] }
  0x50   :  { %598 = vmatpush3.bf16.msra.mxu1 %v597_v15  ;;  %v94_v23 = vld [vmem:[#allocation5 + $0x48] sm:$0xff]  ;;  %v603_v24 = vpack.c.bf16 %v185_v20, %v184_v19  ;;  %v187_v26 = vld [vmem:[#allocation7 + $0x38] sm:$0xff]  ;;  %v95_v28 = vld [vmem:[#allocation5 + $0x50] sm:$0xff] }
  0x51   :  { %599 = vmatprep.subr.bf16.mxu1 %v826_v0  ;;  %v585_v27 = vpack.c.bf16 %v94_v23, %v93_v22  ;;  %v96_v29 = vld [vmem:[#allocation5 + $0x58] sm:$0xff]  ;;  %v606_v30 = vpack.c.bf16 %v187_v26, %v186_v25  ;;  %v188_v31 = vld [vmem:[#allocation7 + $0x40] sm:$0xff]  ;;  %v189_v32 = vld [vmem:[#allocation7 + $0x48] sm:$0xff] }
  0x52   :  { %577 = vmatpush3.bf16.msra.mxu0 %v576_v7  ;;  %v588_v33 = vpack.c.bf16 %v96_v29, %v95_v28  ;;  %v97_v34 = vld [vmem:[#allocation5 + $0x60] sm:$0xff]  ;;  %v98_v35 = vld [vmem:[#allocation5 + $0x68] sm:$0xff]  ;;  %v609_v36 = vpack.c.bf16 %v189_v32, %v188_v31  ;;  %v190_v37 = vld [vmem:[#allocation7 + $0x50] sm:$0xff] }
  0x53   :  { %578 = vmatprep.subr.bf16.mxu0 %v826_v0  ;;  %v191_v38 = vld [vmem:[#allocation7 + $0x58] sm:$0xff]  ;;  %v591_v39 = vpack.c.bf16 %v98_v35, %v97_v34  ;;  %v99_v40 = vld [vmem:[#allocation5 + $0x70] sm:$0xff]  ;;  %v192_v43 = vld [vmem:[#allocation7 + $0x60] sm:$0xff] }
  0x54   :  { %601 = vmatpush3.bf16.msra.mxu1 %v600_v18  ;;  %v100_v41 = vld [vmem:[#allocation5 + $0x78] sm:$0xff]  ;;  %v612_v42 = vpack.c.bf16 %v191_v38, %v190_v37  ;;  %v193_v44 = vld [vmem:[#allocation7 + $0x68] sm:$0xff]  ;;  %v194_v48 = vld [vmem:[#allocation7 + $0x70] sm:$0xff] }
  0x55   :  { %602 = vmatprep.subr.bf16.mxu1 %v826_v0  ;;  %v594_v45 = vpack.c.bf16 %v100_v41, %v99_v40  ;;  %v615_v46 = vpack.c.bf16 %v193_v44, %v192_v43  ;;  %v84_v47 = vld [vmem:[#allocation2] sm:$0xff]  ;;  %v275_v51 = vld [vmem:[#allocation8] sm:$0xff]  ;;  %v276_v52 = vld [vmem:[#allocation8 + $0x8] sm:$0xff] }
  0x56   :  { %580 = vmatpush3.bf16.msra.mxu0 %v579_v14  ;;  %v195_v49 = vld [vmem:[#allocation7 + $0x78] sm:$0xff]  ;;  %v277_v53 = vld [vmem:[#allocation8 + $0x10] sm:$0xff]  ;;  %v621_v54 = vpack.c.bf16 %v276_v52, %v275_v51  ;;  %v279_v57 = vld [vmem:[#allocation8 + $0x20] sm:$0xff] }
  0x57   :  { %581 = vmatprep.subr.bf16.mxu0 %v826_v0  ;;  %v618_v50 = vpack.c.bf16 %v195_v49, %v194_v48  ;;  %v278_v55 = vld [vmem:[#allocation8 + $0x18] sm:$0xff]  ;;  %v280_v58 = vld [vmem:[#allocation8 + $0x28] sm:$0xff]  ;;  %v281_v60 = vld [vmem:[#allocation8 + $0x30] sm:$0xff] }
  0x58   :  { %604 = vmatpush3.bf16.msra.mxu1 %v603_v24  ;;  %v624_v56 = vpack.c.bf16 %v278_v55, %v277_v53  ;;  %v627_v59 = vpack.c.bf16 %v280_v58, %v279_v57  ;;  %v282_v61 = vld [vmem:[#allocation8 + $0x38] sm:$0xff]  ;;  %v283_v63 = vld [vmem:[#allocation8 + $0x40] sm:$0xff]  ;;  %v285_v3 = vld [vmem:[#allocation8 + $0x50] sm:$0xff] }
  0x59   :  { %605 = vmatprep.subr.bf16.mxu1 %v826_v0  ;;  %v630_v62 = vpack.c.bf16 %v282_v61, %v281_v60  ;;  %v286_v4 = vld [vmem:[#allocation8 + $0x58] sm:$0xff]  ;;  %v287_v6 = vld [vmem:[#allocation8 + $0x60] sm:$0xff]  ;;  %v288_v7 = vld [vmem:[#allocation8 + $0x68] sm:$0xff] }
  0x5a   :  { %583 = vmatpush3.bf16.msra.mxu0 %v582_v21  ;;  %v636_v5 = vpack.c.bf16 %v286_v4, %v285_v3  ;;  %v639_v8 = vpack.c.bf16 %v288_v7, %v287_v6  ;;  %v413_v9 = vld [vmem:[%s1016_s2] ss:$0 sm:$0xff]  ;;  %v289_v14 = vld [vmem:[#allocation8 + $0x70] sm:$0xff]  ;;  %s829_s2 = smov [#allocation11]  }
  0x5b   :  { %584 = vmatprep.subr.bf16.mxu0 %v826_v0  ;;  %v290_v15 = vld [vmem:[#allocation8 + $0x78] sm:$0xff]  ;;  %s385_s16 = sshll.u32 %s829_s2, 4  ;;  %s386_s16 = int_to_ptr.vmem [resolvable:$true] %s385_s16 }
  0x5c   :  { %607 = vmatpush3.bf16.msra.mxu1 %v606_v30  ;;  %v642_v16 = vpack.c.bf16 %v290_v15, %v289_v14  ;;  %v414_v17 = vld [vmem:[%s1018_s4] ss:$0 sm:$0xff]  ;;  %s744_s21 = scalar_lea.vmem %s386_s16, 128  ;;  %p749_p5 = scmp.lt.s32.totalorder %s386_s16, %s386_s16 }
  0x5d   :  { %608 = vmatprep.subr.bf16.mxu1 %v826_v0  ;;  %p745_p4 = scmp.ne.s32.totalorder %s386_s16, %s744_s21  ;;  %p750_p6 = scmp.lt.s32.totalorder %s744_s21, %s744_s21 }
  0x5e   :  { %586 = vmatpush3.bf16.msra.mxu0 %v585_v27 }
  0x5f   :  { %587 = vmatprep.subr.bf16.mxu0 %v826_v0  ;;  %p751_p7 = por %p750_p6, %p749_p5 }
  0x60   :  { %610 = vmatpush3.bf16.msra.mxu1 %v609_v36 }
  0x61   :  { %611 = vmatprep.subr.bf16.mxu1 %v826_v0  ;;  %p752_p8 = pnand %p751_p7, %p745_p4 }
  0x62   :  { %589 = vmatpush3.bf16.msra.mxu0 %v588_v33 }
  0x63   :  { %590 = vmatprep.subr.bf16.mxu0 %v826_v0 }
  0x64   :  { %613 = vmatpush3.bf16.msra.mxu1 %v612_v42 }
  0x65   :  { %614 = vmatprep.subr.bf16.mxu1 %v826_v0 }
  0x66   :  { %592 = vmatpush3.bf16.msra.mxu0 %v591_v39 }
  0x67   :  { %593 = vmatprep.subr.bf16.mxu0 %v826_v0 }
  0x68   :  { %616 = vmatpush3.bf16.msra.mxu1 %v615_v46 }
  0x69   :  { %617 = vmatprep.subr.bf16.mxu1 %v826_v0 }
  0x6a   :  { %595 = vmatpush3.bf16.msra.mxu0 %v594_v45 }
  0x6b   :  { %620 = vmatprep.subr.bf16.mxu0 %v826_v0 }
  0x6c   :  { %619 = vmatpush3.bf16.msra.mxu1 %v618_v50 }
  0x6d   :  { %500 = vmatmul.mubr.f32.vlgmr.msra.gmra.mrb[0].mxu0 %v84_v47 }
  0x6e   :  { %569 = vmatprep.mubr.msk.f32.mxu0 %vm827_vm0, %v828_v1  ;;  %622 = vmatpush3.bf16.msra.mxu0 %v621_v54  ;;  %v284_v1 = vld [vmem:[#allocation8 + $0x48] sm:$0xff] }
  0x6f   :  { %623 = vmatprep.subr.bf16.mxu0 %v826_v0  ;;  %v633_v2 = vpack.c.bf16 %v284_v1, %v283_v63 }
  0x72   :  { %625 = vmatpush3.bf16.msra.mxu0 %v624_v56 }
  0x73   :  { %626 = vmatprep.subr.bf16.mxu0 %v826_v0 }
  0x76   :  { %628 = vmatpush3.bf16.msra.mxu0 %v627_v59 }
  0x77   :  { %629 = vmatprep.subr.bf16.mxu0 %v826_v0 }
  0x7a   :  { %631 = vmatpush3.bf16.msra.mxu0 %v630_v62 }
  0x7b   :  { %632 = vmatprep.subr.bf16.mxu0 %v826_v0 }
  0x7e   :  { %634 = vmatpush3.bf16.msra.mxu0 %v633_v2 }
  0x7f   :  { %635 = vmatprep.subr.bf16.mxu0 %v826_v0 }
  0x82   :  { %637 = vmatpush3.bf16.msra.mxu0 %v636_v5 }
  0x83   :  { %638 = vmatprep.subr.bf16.mxu0 %v826_v0 }
  0x86   :  { %640 = vmatpush3.bf16.msra.mxu0 %v639_v8 }
  0x87   :  { %641 = vmatprep.subr.bf16.mxu0 %v826_v0 }
  0x8a   :  { %643 = vmatpush3.bf16.msra.mxu0 %v642_v16 }
 0x140   :  { %v174_v10 = vpop.f32.mrb[0].mxu0 }
 0x141   :  { %v175_v11 = vadd.f32 %v413_v9, %v174_v10  ;;  %v501_v12 = vpop.f32.mrb[1].mxu0 }
 0x143   :  { %v179_v13 = vmax.f32 %v175_v11, 0.0  ;;  %178 = vst [vmem:[#allocation10] sm:$0xff] %v175_v11 }
 0x145   :  { %535 = vmatmul.mubr.f32.vlgmr.msra.gmra.mrb[0].mxu1 %v179_v13 }
 0x218   :  { %v269_v18 = vpop.f32.mrb[0].mxu1 }
 0x219   :  { %v270_v0 = vadd.f32 %v414_v17, %v269_v18  ;;  %v536_v19 = vpop.f32.mrb[1].mxu1 }
 0x21b   :  { %v274_v20 = vmax.f32 %v270_v0, 0.0  ;;  %273 = vst [vmem:[#allocation11] sm:$0xff] %v270_v0 }
 0x21d   :  { %570 = vmatmul.mubr.f32.vlgmr.msra.gmra.mrb[2].mxu0 %v274_v20 }
 0x21e   :  { %755 = shalt.err (!%p752_p8)
}
 0x21f   :  { %s756_s23 = scalar_lea.hbm %s1022_s8, 128 }
 0x220   :  { %p757_p9 = scmp.ne.s32.totalorder %s1022_s8, %s756_s23  ;;  %p760_p10 = scmp.lt.u32.totalorder %s756_s23, %s1022_s8 }
 0x222   :  { %p762_p11 = pnand %p760_p10, %p757_p9 }
 0x224   :  { %765 = shalt.err (!%p762_p11)
}
 0x225   :  { %388 = dma.vmem_to_hbm [thread:$0]  %s386_s16, 128, %s1022_s8, [#allocation12]  }
 0x226   :  { %s766_s30 = scalar_lea.vmem %s376_s18, 128  ;;  %p771_p13 = scmp.lt.s32.totalorder %s376_s18, %s376_s18 }
 0x227   :  { %p767_p12 = scmp.ne.s32.totalorder %s376_s18, %s766_s30  ;;  %p772_p0 = scmp.lt.s32.totalorder %s766_s30, %s766_s30 }
 0x229   :  { %p773_p1 = por %p772_p0, %p771_p13 }
 0x22b   :  { %p774_p2 = pnand %p773_p1, %p767_p12 }
 0x22d   :  { %777 = shalt.err (!%p774_p2)
}
 0x22e   :  { %s778_s13 = scalar_lea.hbm %s1021_s7, 128 }
 0x22f   :  { %p779_p3 = scmp.ne.s32.totalorder %s1021_s7, %s778_s13  ;;  %p782_p4 = scmp.lt.u32.totalorder %s778_s13, %s1021_s7 }
 0x231   :  { %p784_p5 = pnand %p782_p4, %p779_p3 }
 0x233   :  { %787 = shalt.err (!%p784_p5)
}
 0x234   :  { %378 = dma.vmem_to_hbm [thread:$0]  %s376_s18, 128, %s1021_s7, [#allocation4]   ;;  %v415_v21 = vld [vmem:[%s1020_s6] ss:$0 sm:$0xff] }
 0x235   :  { %s831_s20 = smov [#allocation13]  }
 0x236   :  { %s395_s15 = sshll.u32 %s831_s20, 4  ;;  %s396_s15 = int_to_ptr.vmem [resolvable:$true] %s395_s15 }
 0x237   :  { %s788_s2 = scalar_lea.vmem %s396_s15, 128  ;;  %p793_p7 = scmp.lt.s32.totalorder %s396_s15, %s396_s15 }
 0x238   :  { %p789_p6 = scmp.ne.s32.totalorder %s396_s15, %s788_s2  ;;  %p794_p8 = scmp.lt.s32.totalorder %s788_s2, %s788_s2 }
 0x23a   :  { %p795_p9 = por %p794_p8, %p793_p7 }
 0x23c   :  { %p796_p10 = pnand %p795_p9, %p789_p6 }
 0x2f0   :  { %v364_v22 = vpop.f32.mrb[2].mxu0 }
 0x2f1   :  { %v365_v23 = vadd.f32 %v415_v21, %v364_v22  ;;  %v571_v24 = vpop.f32.mrb[3].mxu0 }
 0x2f3   :  { %368 = vst [vmem:[#allocation13] sm:$0xff] %v365_v23 }
 0x2f4   :  { %799 = shalt.err (!%p796_p10)
}
 0x2f5   :  { %s800_s17 = scalar_lea.hbm %s1023_s9, 128 }
 0x2f6   :  { %p801_p11 = scmp.ne.s32.totalorder %s1023_s9, %s800_s17  ;;  %p804_p12 = scmp.lt.u32.totalorder %s800_s17, %s1023_s9 }
 0x2f8   :  { %p806_p13 = pnand %p804_p12, %p801_p11 }
 0x2fa   :  { %809 = shalt.err (!%p806_p13)
}
 0x2fb   :  { %398 = dma.vmem_to_hbm [thread:$0]  %s396_s15, 128, %s1023_s9, [#allocation12]  }
 0x2fc   :  { %816 = dma.done.wait [#allocation4], 128  }
 0x2fd   :  { %817 = vsyncadd [#allocation4], 4294967168 }
 0x2fe   :  { %818 = dma.done.wait [#allocation12], 256  }
 0x2ff   :  { %819 = vsyncadd [#allocation12], 4294967040 }
 0x300   :  { %408 = vsyncpa [#allocation3], 1 }
 0x301   :  { %409 = vsyncpa [#allocation6], 1 }
 0x302   :  { %410 = vsyncpa [#allocation9], 1 }
 0x303   :  { %411 = vsyncpa [#allocation4], 1 }
 0x304   :  { %412 = vsyncpa [#allocation12], 1 }

</bundles_post_ra>
